<compile_context>
chip_gen: v6e
topology: v6e:2x2x1
jax: 0.10.0
libtpu: 0.0.40
codegen_flags: <defaults>
</compile_context>

<pallas_src>
import math

import jax
import jax.numpy as jnp
from jax.experimental import pallas as pl
from jax.experimental.pallas import tpu as pltpu


def _round_up(x, m):
    return ((x + m - 1) // m) * m


def _prompt_kernel(w_ref, x_ref, o_ref):
    # w_ref: (1, tile_h) weight tile (broadcast over rows)
    # x_ref: (tile_n, tile_h) embedding tile
    o_ref[...] = w_ref[...] * x_ref[...]


def _num_tensorcores():
    """Best-effort TensorCore count (2 on v7x-style megacore, else 1)."""
    try:
        info = pltpu.get_tpu_info()
        for attr in ("num_cores", "core_count", "tensorcore_count", "num_tensorcores"):
            v = getattr(info, attr, None)
            if isinstance(v, int) and v > 0:
                return v
    except Exception:
        pass
    try:
        v = getattr(jax.devices()[0], "num_cores", None)
        if isinstance(v, int) and v > 0:
            return v
    except Exception:
        pass
    return 1


def _tiled_prompt(x, weight, *, target_block_bytes=4 * 1024 * 1024, donate_x=False):
    """Elementwise weight * x for 2-D x:(M, L), weight:(1, L). No wrapper padding."""
    M, L = x.shape
    weight = weight.astype(x.dtype)
    itemsize = jnp.dtype(x.dtype).itemsize
    # dtype-aware sublane multiple: 8 (f32), 16 (bf16/f16), 32 (int8/fp8)
    sub = 8 * max(1, 4 // itemsize)

    # ---- lane (last-dim) tile ----
    if sub * L * itemsize > target_block_bytes:
        # Even a minimal-row block is over budget -> split lanes on a 128
        # boundary (works for any L; the last lane block is partial).
        tile_h = (target_block_bytes // (sub * itemsize)) // 128 * 128
        tile_h = max(128, min(4096, tile_h))
    else:
        tile_h = L  # full last dim: always a legal block dim, no lane padding

    # ---- row (second-minor) tile: fill ~target_block_bytes per block ----
    rows = max(sub, (target_block_bytes // (tile_h * itemsize)) // sub * sub)
    tile_n = M if rows >= M else rows  # full dim or a multiple of `sub`: legal

    # Megacore: only when there are >=2 TensorCores and the grid collapsed to
    # fewer steps than cores, split rows so the "parallel" axes can shard.
    n_cores = _num_tensorcores()
    if (
        n_cores > 1
        and pl.cdiv(M, tile_n) * pl.cdiv(L, tile_h) < n_cores
        and M > sub
        and M * L * itemsize > (1 << 20)
    ):
        split = _round_up(pl.cdiv(M, n_cores), sub)
        if split < M:
            tile_n = split

    grid = (pl.cdiv(M, tile_n), pl.cdiv(L, tile_h))

    extra = {}
    if donate_x:
        # inputs are (weight, x) -> output 0 reuses x's HBM buffer
        extra["input_output_aliases"] = {1: 0}

    return pl.pallas_call(
        _prompt_kernel,
        out_shape=jax.ShapeDtypeStruct((M, L), x.dtype),
        grid_spec=pltpu.PrefetchScalarGridSpec(
            num_scalar_prefetch=0,
            grid=grid,
            in_specs=[
                # weight: one lane-tile, constant across the row axis (resident)
                pl.BlockSpec((1, tile_h), lambda i, j: (0, j)),
                # x: (row-tile i, lane-tile j); boundary blocks are partial
                pl.BlockSpec((tile_n, tile_h), lambda i, j: (i, j)),
            ],
            out_specs=pl.BlockSpec((tile_n, tile_h), lambda i, j: (i, j)),
        ),
        compiler_params=pltpu.CompilerParams(
            dimension_semantics=("parallel", "parallel"),
            # 2x double-buffered ~4 MiB blocks (x + out) ~= 16 MiB; 40 MiB
            # leaves headroom on v7x's 64 MiB/TC and fits v5e/v6e easily.
            vmem_limit_bytes=40 * 1024 * 1024,
        ),
        **extra,
    )(weight, x)


def downstream_prompt(
    x,
    weight,
    *,
    small_bytes_threshold=256 * 1024,
    target_block_bytes=4 * 1024 * 1024,
    donate_x=False,
):
    """Pallas implementation of `downstreamprompt.forward`.

    x:      (N, H) graph embeddings
    weight: (1, H) learned prompt weight
    returns (N, H), == weight * x (broadcast over rows)
    """
    N, H = x.shape
    assert weight.shape == (1, H)

    # Tiny-input fast path: pallas_call fixed cost dwarfs the work; XLA's
    # fused broadcast-multiply is already at roofline for such sizes.
    if N * H * jnp.dtype(x.dtype).itemsize < small_bytes_threshold:
        return weight.astype(x.dtype) * x

    return _tiled_prompt(
        x, weight, target_block_bytes=target_block_bytes, donate_x=donate_x
    )


def xavier_uniform(key, shape, dtype=jnp.float32):
    # torch.nn.init.xavier_uniform_ for a (fan_out, fan_in) = (1, hid_units) tensor:
    # bound = sqrt(6 / (fan_in + fan_out))
    fan_out, fan_in = shape
    bound = math.sqrt(6.0 / (fan_in + fan_out))
    return jax.random.uniform(key, shape, dtype, minval=-bound, maxval=bound)


if __name__ == "__main__":
    key = jax.random.PRNGKey(0)
    k_w, k_x, k_w2, k_x2, k_w3, k_x3 = jax.random.split(key, 6)

    # --- 1) module's natural small usage (hid_units=32): XLA fast path ---
    hid_units, n_graphs = 32, 8
    weight = xavier_uniform(k_w, (1, hid_units))
    x = jax.random.normal(k_x, (n_graphs, hid_units), dtype=jnp.float32)
    out = jax.block_until_ready(downstream_prompt(x, weight))
    assert out.shape == (n_graphs, hid_units)
    assert jnp.allclose(out, weight * x, atol=1e-6, rtol=1e-6)

    # --- 2) Pallas path, ragged rows + small non-128 lane dim (no padding) ---
    hid2, n2 = 48, 100
    weight2 = xavier_uniform(k_w2, (1, hid2))
    x2 = jax.random.normal(k_x2, (n2, hid2), dtype=jnp.float32)
    out2 = jax.block_until_ready(
        downstream_prompt(x2, weight2, small_bytes_threshold=0)
    )
    assert out2.shape == (n2, hid2)
    assert jnp.allclose(out2, weight2 * x2, atol=1e-6, rtol=1e-6)

    # --- 3) Pallas path with lane split + partial boundary blocks on both axes ---
    hid3, n3 = 17 * 128, 37  # L=2176 is not a multiple of the 2048-lane tile
    weight3 = xavier_uniform(k_w3, (1, hid3))
    x3 = jax.random.normal(k_x3, (n3, hid3), dtype=jnp.float32)
    out3 = jax.block_until_ready(
        downstream_prompt(
            x3, weight3, small_bytes_threshold=0, target_block_bytes=64 * 1024
        )
    )
    assert out3.shape == (n3, hid3)
    assert jnp.allclose(out3, weight3 * x3, atol=1e-6, rtol=1e-6)

    print("KERNEL_OK")
</pallas_src>

<mosaic_0001>
module attributes {stable_mosaic.version = 11 : i64} {
  func.func @_prompt_kernel(%arg0: i32, %arg1: i32, %arg2: memref<1x48xf32, #tpu.memory_space<vmem>>, %arg3: memref<100x48xf32, #tpu.memory_space<vmem>>, %arg4: memref<100x48xf32, #tpu.memory_space<vmem>>) attributes {dimension_semantics = [#tpu.dimension_semantics<parallel>, #tpu.dimension_semantics<parallel>], iteration_bounds = array<i64: 1, 1>, scalar_prefetch = 0 : i64, scratch_operands = 0 : i64, tpu.core_type = #tpu.core_type<tc>, window_params = [{transform_indices = @transform_0, window_bounds = array<i64: 1, 48>}, {transform_indices = @transform_1, window_bounds = array<i64: 100, 48>}, {transform_indices = @transform_2, window_bounds = array<i64: 100, 48>}]} {
    %c0 = arith.constant 0 : index
    %c0_0 = arith.constant 0 : index
    %0 = vector.load %arg2[%c0, %c0_0] : memref<1x48xf32, #tpu.memory_space<vmem>>, vector<1x48xf32>
    %c0_1 = arith.constant 0 : index
    %c0_2 = arith.constant 0 : index
    %1 = vector.load %arg3[%c0_1, %c0_2] : memref<100x48xf32, #tpu.memory_space<vmem>>, vector<100x48xf32>
    %2 = vector.broadcast %0 : vector<1x48xf32> to vector<100x48xf32>
    %3 = arith.mulf %2, %1 : vector<100x48xf32>
    %c0_3 = arith.constant 0 : index
    %c0_4 = arith.constant 0 : index
    %4 = vector.load %arg4[%c0_3, %c0_4] : memref<100x48xf32, #tpu.memory_space<vmem>>, vector<100x48xf32>
    tpu.vector_store %arg4[%c0_3, %c0_4], %3 {strides = array<i32>} : memref<100x48xf32, #tpu.memory_space<vmem>>, vector<100x48xf32>,
    return
  }
  func.func @transform_0(%arg0: i32, %arg1: i32) -> (i32, i32) {
    %c0_i32 = arith.constant 0 : i32
    %c0_i32_0 = arith.constant 0 : i32
    return %c0_i32, %arg1 : i32, i32
  }
  func.func @transform_1(%arg0: i32, %arg1: i32) -> (i32, i32) {
    %c0_i32 = arith.constant 0 : i32
    return %arg0, %arg1 : i32, i32
  }
  func.func @transform_2(%arg0: i32, %arg1: i32) -> (i32, i32) {
    %c0_i32 = arith.constant 0 : i32
    return %arg0, %arg1 : i32, i32
  }
}

</mosaic_0001>

<bundles_post_ra>
// kernel: tpu_custom_call.1
= control target key start
LH: loop header
LB: loop body
LE: loop exit
PB: predicated region body
PF: predicated region fallthrough
CT: control target
= control target key end

     0   :  { %vm44_vm0 = vcmask 392192   ;;  %vm57_vm1 = vcmask 388096   ;;  %s172_s0 = inlined_call_operand.vmem [shape: f32[1,48], index: 0, kind: input, shape index: {}]   ;;  %s173_s1 = inlined_call_operand.vmem [shape: f32[100,48], index: 1, kind: input, shape index: {}]   ;;  %s174_s2 = inlined_call_operand.vmem [shape: f32[100,48], index: 2, kind: output, shape index: {}]  }
   0x1   :  { %v63_v0 = vld [vmem:[%s172_s0] ss:$0 sm:$0xff]  ;;  %v13_v2 = vld [vmem:[%s173_s1 + $0x8] sm:$0xff]  ;;  %v14_v5 = vld [vmem:[%s173_s1 + $0x10] sm:$0xff] }
   0x2   :  { %v12_v1 = vld [vmem:[%s173_s1] sm:$0xff]  ;;  %v32_v4 = vmul.f32 %v63_v0, %v13_v2  ;;  %v15_v6 = vld [vmem:[%s173_s1 + $0x18] sm:$0xff]  ;;  %v33_v8 = vmul.f32 %v63_v0, %v14_v5  ;;  %v17_v11 = vld [vmem:[%s173_s1 + $0x28] sm:$0xff] }
   0x3   :  { %v31_v3 = vmul.f32 %v63_v0, %v12_v1  ;;  %v16_v7 = vld [vmem:[%s173_s1 + $0x20] sm:$0xff]  ;;  %v34_v9 = vmul.f32 %v63_v0, %v15_v6  ;;  %v18_v12 = vld [vmem:[%s173_s1 + $0x30] sm:$0xff]  ;;  %v19_v13 = vld [vmem:[%s173_s1 + $0x38] sm:$0xff]  ;;  %v36_v14 = vmul.f32 %v63_v0, %v17_v11 }
   0x4   :  { %v35_v10 = vmul.f32 %v63_v0, %v16_v7  ;;  %46 = vst.msk [vmem:[%s174_s2 + $0x8] sm:$0xff] %vm44_vm0, %v32_v4  ;;  %v37_v15 = vmul.f32 %v63_v0, %v18_v12  ;;  %v38_v16 = vmul.f32 %v63_v0, %v19_v13  ;;  %v20_v17 = vld [vmem:[%s173_s1 + $0x40] sm:$0xff]  ;;  %v21_v18 = vld [vmem:[%s173_s1 + $0x48] sm:$0xff]  ;;  %v22_v19 = vld [vmem:[%s173_s1 + $0x50] sm:$0xff] }
   0x5   :  { %45 = vst.msk [vmem:[%s174_s2] sm:$0xff] %vm44_vm0, %v31_v3  ;;  %47 = vst.msk [vmem:[%s174_s2 + $0x10] sm:$0xff] %vm44_vm0, %v33_v8  ;;  %v39_v20 = vmul.f32 %v63_v0, %v20_v17  ;;  %v40_v21 = vmul.f32 %v63_v0, %v21_v18  ;;  %v41_v22 = vmul.f32 %v63_v0, %v22_v19  ;;  %v23_v23 = vld [vmem:[%s173_s1 + $0x58] sm:$0xff]  ;;  %v24_v24 = vld [vmem:[%s173_s1 + $0x60] sm:$0xf] }
   0x6   :  { %48 = vst.msk [vmem:[%s174_s2 + $0x18] sm:$0xff] %vm44_vm0, %v34_v9  ;;  %49 = vst.msk [vmem:[%s174_s2 + $0x20] sm:$0xff] %vm44_vm0, %v35_v10  ;;  %v42_v25 = vmul.f32 %v63_v0, %v23_v23  ;;  %v43_v26 = vmul.f32 %v63_v0, %v24_v24 }
   0x7   :  { %50 = vst.msk [vmem:[%s174_s2 + $0x28] sm:$0xff] %vm44_vm0, %v36_v14  ;;  %51 = vst.msk [vmem:[%s174_s2 + $0x30] sm:$0xff] %vm44_vm0, %v37_v15 }
   0x8   :  { %52 = vst.msk [vmem:[%s174_s2 + $0x38] sm:$0xff] %vm44_vm0, %v38_v16  ;;  %53 = vst.msk [vmem:[%s174_s2 + $0x40] sm:$0xff] %vm44_vm0, %v39_v20 }
   0x9   :  { %54 = vst.msk [vmem:[%s174_s2 + $0x48] sm:$0xff] %vm44_vm0, %v40_v21  ;;  %55 = vst.msk [vmem:[%s174_s2 + $0x50] sm:$0xff] %vm44_vm0, %v41_v22 }
   0xa   :  { %56 = vst.msk [vmem:[%s174_s2 + $0x58] sm:$0xff] %vm44_vm0, %v42_v25 }
   0xb   :  { %58 = vst.msk [vmem:[%s174_s2 + $0x60] sm:$0xf] %vm57_vm1, %v43_v26 }

</bundles_post_ra>
